<compile_context>
chip_gen: v5e
topology: v5e:2x2
jax: 0.10.0
libtpu: 0.0.40
codegen_flags: <defaults>
</compile_context>

<pallas_src>
import functools
import math

import jax
import jax.numpy as jnp
from jax.experimental import pallas as pl
from jax.experimental.pallas import tpu as pltpu

EPSILON = 1.0 / math.e


def _pagerank_kernel(adj_ref, x_ref, w1_ref, b1_ref, w2_ref, b2_ref, o_ref,
                     *, lane_dense_out):
    # adj_ref: (1, N*TB, N*TB) node-major-interleaved block-diagonal hop-1 adj
    # x_ref:   (N, TB, Fin)    native node-major layout (batch on sublanes)
    # o_ref:   (N, TB*Fout)    if lane_dense_out else (N, TB, Fout)
    n, tb, fin = x_ref.shape
    fout = w2_ref.shape[1]

    # Node-major slab: row i*TB + t == (node i, local batch t).  Merging the two
    # leading (sublane-side) dims leaves the lane dim (Fin) untouched.
    x2d = x_ref[...].reshape(n * tb, fin)

    # --- Propagation: ONE block-diagonal MXU pass + hoisted residual ---------
    #   h[i*TB + t, :] = adj_t @ x_t (block-diag)  +  (1 + eps) * x[i, t, :]
    h = (jnp.dot(adj_ref[0], x2d, preferred_element_type=jnp.float32)
         + (1.0 + EPSILON) * x2d)

    # --- 2-layer MLP on the stacked (N*TB, .) slab, then outer ReLU ----------
    h1 = jnp.dot(h, w1_ref[...], preferred_element_type=jnp.float32) + b1_ref[...]
    h1 = jnp.maximum(h1, 0.0)                       # MLP inner ReLU
    h2 = jnp.dot(h1, w2_ref[...], preferred_element_type=jnp.float32) + b2_ref[...]
    out = jnp.maximum(h2, 0.0)                      # layer act; dropout(p=0) = id

    out3d = out.reshape(n, tb, fout)                # split of the leading dim
    if lane_dense_out:
        # (N, TB, Fout) -> (N, TB*Fout): one full-width unmasked store per row
        # instead of TB masked Fout-lane partial stores.
        o_ref[...] = out3d.reshape(n, tb * fout).astype(o_ref.dtype)
    else:
        o_ref[...] = out3d.astype(o_ref.dtype)


def _tensorcores_per_chip():
    """Best-effort TensorCores-per-chip count (v7x: 2, v5e/v6e: 1)."""
    try:
        info = pltpu.get_tpu_info()
        for attr in ("num_tensorcores", "tensorcores_per_chip",
                     "num_cores_per_chip", "tensorcore_count"):
            val = getattr(info, attr, None)
            if isinstance(val, int) and val > 0:
                return val
    except Exception:
        pass
    try:
        kind = jax.devices()[0].device_kind.lower()
        if "v7" in kind:
            return 2
    except Exception:
        pass
    return 1


def _batch_tile(B, Fout, n_cores):
    """Batches per grid step (generation-aware).

    On 1-TC chips the grid is a serial loop: TB=B (grid=(1,)) avoids per-step
    overhead (~0.35 us/step) and maximizes the MXU M-dim.  On multi-TC chips
    (v7x) keep the grid extent >= #TensorCores so every core gets work.
    Constraints: x/out block sublane dim (TB) must be a multiple of 8 or == B;
    the lane-dense out block (TB*Fout) must be a multiple of 128 or == B*Fout.
    """
    def ok(tb):
        return (B % tb == 0
                and (tb % 8 == 0 or tb == B)
                and ((tb * Fout) % 128 == 0 or tb == B))

    if n_cores <= 1:
        return B
    for tb in range(B, 0, -1):
        if ok(tb) and B // tb >= n_cores:
            return tb
    return B


def pagerank_layer(x, adj_batch, w1, b1, w2, b2, *, batch_tile=None):
    """x: (N, B, Fin), adj_batch: (B, K, N, N) -> out: (N, B, Fout)."""
    N, B, Fin = x.shape
    H = w1.shape[1]
    Fout = w2.shape[1]
    assert adj_batch.shape[0] == B and adj_batch.shape[2:] == (N, N)
    assert adj_batch.shape[1] >= 2, "hop index 1 must exist (adj_batch[:, 1])"
    assert w1.shape == (Fin, H) and w2.shape == (H, Fout)

    n_cores = _tensorcores_per_chip()
    TB = batch_tile if batch_tile is not None else _batch_tile(B, Fout, n_cores)
    assert B % TB == 0 and (TB % 8 == 0 or TB == B), "invalid batch tile"
    G = B // TB
    NT = N * TB

    # Hop-1 slice + node-major-interleaved block-diagonal adjacency, built once
    # in the wrapper (G*NT*NT*4 bytes; 64 KiB at these shapes):
    #   adj_bd[g, i*TB + t, j*TB + s] = adj_batch[g*TB + t, 1, i, j] * delta(t, s)
    # This replaces TB serialized (N,N)@(N,Fin) MXU passes with ONE
    # (NT,NT)@(NT,Fin) pass per grid step and deletes the h scratch entirely.
    # NOTE: for large N this O(B*TB*N^2) slab is the wrong trade — revert to the
    # per-batch index_map-sliced adjacency (previous rev) and add a node-row
    # grid axis, re-deriving tile sizes against v7x's 64 MiB VMEM (32 MiB scoped
    # default) and casting the dot operands to bf16 once MXU/HBM-bound.
    adj1 = adj_batch[:, 1, :, :].reshape(G, TB, N, N)
    eye = jnp.eye(TB, dtype=adj_batch.dtype)
    adj_bd = jnp.einsum("gtij,ts->gitjs", adj1, eye).reshape(G, NT, NT)

    # Biases as (1, F) rows for lane-aligned broadcast adds.
    b1_2d = b1.reshape(1, H)
    b2_2d = b2.reshape(1, Fout)

    def build_call(lane_dense_out, weight_pipeline_mode):
        wkw = ({} if weight_pipeline_mode is None
               else {"pipeline_mode": weight_pipeline_mode})
        in_specs = [
            # Block-diagonal hop-1 adjacency for this batch group.
            pl.BlockSpec((1, NT, NT), lambda g: (g, 0, 0)),
            # x in native (N, B, Fin) layout: carve TB batch columns.
            pl.BlockSpec((N, TB, Fin), lambda g: (0, g, 0)),
            # Weights / biases: constant block index (single-buffered if supported).
            pl.BlockSpec((Fin, H), lambda g: (0, 0), **wkw),
            pl.BlockSpec((1, H), lambda g: (0, 0), **wkw),
            pl.BlockSpec((H, Fout), lambda g: (0, 0), **wkw),
            pl.BlockSpec((1, Fout), lambda g: (0, 0), **wkw),
        ]
        if lane_dense_out:
            out_shape = jax.ShapeDtypeStruct((N, B * Fout), x.dtype)
            out_spec = pl.BlockSpec((N, TB * Fout), lambda g: (0, g))
        else:
            out_shape = jax.ShapeDtypeStruct((N, B, Fout), x.dtype)
            out_spec = pl.BlockSpec((N, TB, Fout), lambda g: (0, g, 0))
        return pl.pallas_call(
            functools.partial(_pagerank_kernel, lane_dense_out=lane_dense_out),
            out_shape=out_shape,
            grid_spec=pltpu.PrefetchScalarGridSpec(
                num_scalar_prefetch=0,
                grid=(G,),
                in_specs=in_specs,
                out_specs=out_spec,
            ),
            compiler_params=pltpu.CompilerParams(
                dimension_semantics=("parallel",)),
        )

    args = (adj_bd, x, w1, b1_2d, w2, b2_2d)
    try:
        # Optimized config: lane-dense 2-D output block + Buffered(1) weights.
        out = build_call(True, pl.Buffered(1))(*args)
        out = jax.block_until_ready(out).reshape(N, B, Fout)
    except Exception:
        # Conservative fallback (layout patterns proven in the previous rev):
        # 3-D (N, TB, Fout) output block, default-buffered weights.
        out = build_call(False, None)(*args)
        out = jax.block_until_ready(out)
    return out                                                 # (N, B, Fout)


if __name__ == "__main__":
    # Small shapes consistent with the module's forward.
    N, B, K = 8, 16, 2         # nodes, batch, adjacency "hops" (index 1 is used)
    Fin, Fout = 16, 32         # input_dim, output_dim (hidden == output in MLP)

    key = jax.random.PRNGKey(0)
    kx, ka, k1, k2, k3, k4 = jax.random.split(key, 6)

    x = jax.random.normal(kx, (N, B, Fin), dtype=jnp.float32)
    adj_batch = jax.random.uniform(ka, (B, K, N, N), dtype=jnp.float32)

    # Deterministic parameter init (Linear-style fan-in scaling).
    w1 = jax.random.normal(k1, (Fin, Fout), dtype=jnp.float32) / math.sqrt(Fin)
    b1 = jax.random.normal(k2, (Fout,), dtype=jnp.float32) * 0.01
    w2 = jax.random.normal(k3, (Fout, Fout), dtype=jnp.float32) / math.sqrt(Fout)
    b2 = jax.random.normal(k4, (Fout,), dtype=jnp.float32) * 0.01

    # Pure-JAX reference (torch semantics).
    xt = jnp.transpose(x, (1, 0, 2))                            # (B, N, Fin)
    h = jnp.einsum("bij,bjf->bif", adj_batch[:, 1], xt) + (1.0 + EPSILON) * xt
    h = jnp.maximum(h @ w1 + b1, 0.0)
    h = h @ w2 + b2
    ref = jnp.transpose(jnp.maximum(h, 0.0), (1, 0, 2))         # (N, B, Fout)

    # Auto (generation-aware) tiling: grid=(1,) on 1-TC chips, >=2 steps on v7x.
    out_auto = jax.block_until_ready(pagerank_layer(x, adj_batch, w1, b1, w2, b2))
    # Forced 2-step grid exercises the multi-group batch-tiling path everywhere.
    out_tiled = jax.block_until_ready(
        pagerank_layer(x, adj_batch, w1, b1, w2, b2, batch_tile=8))

    for out in (out_auto, out_tiled):
        assert out.shape == (N, B, Fout)
        assert jnp.allclose(out, ref, atol=1e-5, rtol=1e-5), float(
            jnp.max(jnp.abs(out - ref)))

    print("KERNEL_OK")
</pallas_src>

<mosaic_0001>
module attributes {stable_mosaic.version = 11 : i64} {
  func.func @_pagerank_kernel(%arg0: i32, %arg1: memref<1x128x128xf32, #tpu.memory_space<vmem>>, %arg2: memref<8x16x16xf32, #tpu.memory_space<vmem>>, %arg3: memref<16x32xf32, #tpu.memory_space<vmem>>, %arg4: memref<1x32xf32, #tpu.memory_space<vmem>>, %arg5: memref<32x32xf32, #tpu.memory_space<vmem>>, %arg6: memref<1x32xf32, #tpu.memory_space<vmem>>, %arg7: memref<8x512xf32, #tpu.memory_space<vmem>>) attributes {dimension_semantics = [#tpu.dimension_semantics<parallel>], iteration_bounds = array<i64: 1>, scalar_prefetch = 0 : i64, scratch_operands = 0 : i64, tpu.core_type = #tpu.core_type<tc>, window_params = [{transform_indices = @transform_0, window_bounds = array<i64: 1, 128, 128>}, {transform_indices = @transform_1, window_bounds = array<i64: 8, 16, 16>}, {pipeline_mode = #tpu.pipeline_mode<synchronous>, transform_indices = @transform_2, window_bounds = array<i64: 16, 32>}, {pipeline_mode = #tpu.pipeline_mode<synchronous>, transform_indices = @transform_3, window_bounds = array<i64: 1, 32>}, {pipeline_mode = #tpu.pipeline_mode<synchronous>, transform_indices = @transform_4, window_bounds = array<i64: 32, 32>}, {pipeline_mode = #tpu.pipeline_mode<synchronous>, transform_indices = @transform_5, window_bounds = array<i64: 1, 32>}, {transform_indices = @transform_6, window_bounds = array<i64: 8, 512>}]} {
    %c0 = arith.constant 0 : index
    %c0_0 = arith.constant 0 : index
    %c0_1 = arith.constant 0 : index
    %0 = vector.load %arg2[%c0, %c0_0, %c0_1] : memref<8x16x16xf32, #tpu.memory_space<vmem>>, vector<8x16x16xf32>
    %1 = vector.shape_cast %0 : vector<8x16x16xf32> to vector<128x16xf32>
    %c0_2 = arith.constant 0 : index
    %c0_3 = arith.constant 0 : index
    %c0_4 = arith.constant 0 : index
    %2 = vector.load %arg1[%c0_2, %c0_3, %c0_4] : memref<1x128x128xf32, #tpu.memory_space<vmem>>, vector<1x128x128xf32>
    %3 = vector.shape_cast %2 : vector<1x128x128xf32> to vector<128x128xf32>
    %cst = arith.constant dense<0.000000e+00> : vector<128x16xf32>
    %4 = tpu.matmul %3, %1, %cst {dimension_numbers = #tpu.dot_dimension_numbers<[1], [0], [0], [1], [0, 0, 1, 1], [], []>} : vector<128x128xf32>, vector<128x16xf32>, vector<128x16xf32> -> vector<128x16xf32>
    %cst_5 = arith.constant 1.36787939 : f32
    %5 = vector.broadcast %cst_5 : f32 to vector<128x16xf32>
    %6 = arith.mulf %5, %1 : vector<128x16xf32>
    %7 = arith.addf %4, %6 : vector<128x16xf32>
    %c0_6 = arith.constant 0 : index
    %c0_7 = arith.constant 0 : index
    %8 = vector.load %arg3[%c0_6, %c0_7] : memref<16x32xf32, #tpu.memory_space<vmem>>, vector<16x32xf32>
    %cst_8 = arith.constant dense<0.000000e+00> : vector<128x32xf32>
    %9 = tpu.matmul %7, %8, %cst_8 {dimension_numbers = #tpu.dot_dimension_numbers<[1], [0], [0], [1], [0, 0, 1, 1], [], []>} : vector<128x16xf32>, vector<16x32xf32>, vector<128x32xf32> -> vector<128x32xf32>
    %c0_9 = arith.constant 0 : index
    %c0_10 = arith.constant 0 : index
    %10 = vector.load %arg4[%c0_9, %c0_10] : memref<1x32xf32, #tpu.memory_space<vmem>>, vector<1x32xf32>
    %11 = vector.broadcast %10 : vector<1x32xf32> to vector<128x32xf32>
    %12 = arith.addf %9, %11 : vector<128x32xf32>
    %cst_11 = arith.constant 0.000000e+00 : f32
    %13 = vector.broadcast %cst_11 : f32 to vector<128x32xf32>
    %14 = arith.maximumf %12, %13 : vector<128x32xf32>
    %c0_12 = arith.constant 0 : index
    %c0_13 = arith.constant 0 : index
    %15 = vector.load %arg5[%c0_12, %c0_13] : memref<32x32xf32, #tpu.memory_space<vmem>>, vector<32x32xf32>
    %cst_14 = arith.constant dense<0.000000e+00> : vector<128x32xf32>
    %16 = tpu.matmul %14, %15, %cst_14 {dimension_numbers = #tpu.dot_dimension_numbers<[1], [0], [0], [1], [0, 0, 1, 1], [], []>} : vector<128x32xf32>, vector<32x32xf32>, vector<128x32xf32> -> vector<128x32xf32>
    %c0_15 = arith.constant 0 : index
    %c0_16 = arith.constant 0 : index
    %17 = vector.load %arg6[%c0_15, %c0_16] : memref<1x32xf32, #tpu.memory_space<vmem>>, vector<1x32xf32>
    %18 = vector.broadcast %17 : vector<1x32xf32> to vector<128x32xf32>
    %19 = arith.addf %16, %18 : vector<128x32xf32>
    %cst_17 = arith.constant 0.000000e+00 : f32
    %20 = vector.broadcast %cst_17 : f32 to vector<128x32xf32>
    %21 = arith.maximumf %19, %20 : vector<128x32xf32>
    %22 = vector.shape_cast %21 : vector<128x32xf32> to vector<8x16x32xf32>
    %23 = vector.shape_cast %22 : vector<8x16x32xf32> to vector<8x512xf32>
    %c0_18 = arith.constant 0 : index
    %c0_19 = arith.constant 0 : index
    %24 = vector.load %arg7[%c0_18, %c0_19] : memref<8x512xf32, #tpu.memory_space<vmem>>, vector<8x512xf32>
    tpu.vector_store %arg7[%c0_18, %c0_19], %23 {strides = array<i32>} : memref<8x512xf32, #tpu.memory_space<vmem>>, vector<8x512xf32>,
    return
  }
  func.func @transform_0(%arg0: i32) -> (i32, i32, i32) {
    %c0_i32 = arith.constant 0 : i32
    %c0_i32_0 = arith.constant 0 : i32
    %c0_i32_1 = arith.constant 0 : i32
    return %arg0, %c0_i32, %c0_i32_0 : i32, i32, i32
  }
  func.func @transform_1(%arg0: i32) -> (i32, i32, i32) {
    %c0_i32 = arith.constant 0 : i32
    %c0_i32_0 = arith.constant 0 : i32
    %c0_i32_1 = arith.constant 0 : i32
    return %c0_i32, %arg0, %c0_i32_0 : i32, i32, i32
  }
  func.func @transform_2(%arg0: i32) -> (i32, i32) {
    %c0_i32 = arith.constant 0 : i32
    %c0_i32_0 = arith.constant 0 : i32
    %c0_i32_1 = arith.constant 0 : i32
    return %c0_i32, %c0_i32_0 : i32, i32
  }
  func.func @transform_3(%arg0: i32) -> (i32, i32) {
    %c0_i32 = arith.constant 0 : i32
    %c0_i32_0 = arith.constant 0 : i32
    %c0_i32_1 = arith.constant 0 : i32
    return %c0_i32, %c0_i32_0 : i32, i32
  }
  func.func @transform_4(%arg0: i32) -> (i32, i32) {
    %c0_i32 = arith.constant 0 : i32
    %c0_i32_0 = arith.constant 0 : i32
    %c0_i32_1 = arith.constant 0 : i32
    return %c0_i32, %c0_i32_0 : i32, i32
  }
  func.func @transform_5(%arg0: i32) -> (i32, i32) {
    %c0_i32 = arith.constant 0 : i32
    %c0_i32_0 = arith.constant 0 : i32
    %c0_i32_1 = arith.constant 0 : i32
    return %c0_i32, %c0_i32_0 : i32, i32
  }
  func.func @transform_6(%arg0: i32) -> (i32, i32) {
    %c0_i32 = arith.constant 0 : i32
    %c0_i32_0 = arith.constant 0 : i32
    return %c0_i32, %arg0 : i32, i32
  }
}

module attributes {stable_mosaic.version = 11 : i64} {
  func.func @_pagerank_kernel(%arg0: i32, %arg1: memref<1x128x128xf32, #tpu.memory_space<vmem>>, %arg2: memref<8x16x16xf32, #tpu.memory_space<vmem>>, %arg3: memref<16x32xf32, #tpu.memory_space<vmem>>, %arg4: memref<1x32xf32, #tpu.memory_space<vmem>>, %arg5: memref<32x32xf32, #tpu.memory_space<vmem>>, %arg6: memref<1x32xf32, #tpu.memory_space<vmem>>, %arg7: memref<8x16x32xf32, #tpu.memory_space<vmem>>) attributes {dimension_semantics = [#tpu.dimension_semantics<parallel>], iteration_bounds = array<i64: 1>, scalar_prefetch = 0 : i64, scratch_operands = 0 : i64, tpu.core_type = #tpu.core_type<tc>, window_params = [{transform_indices = @transform_0, window_bounds = array<i64: 1, 128, 128>}, {transform_indices = @transform_1, window_bounds = array<i64: 8, 16, 16>}, {pipeline_mode = #tpu.pipeline_mode<synchronous>, transform_indices = @transform_2, window_bounds = array<i64: 16, 32>}, {pipeline_mode = #tpu.pipeline_mode<synchronous>, transform_indices = @transform_3, window_bounds = array<i64: 1, 32>}, {pipeline_mode = #tpu.pipeline_mode<synchronous>, transform_indices = @transform_4, window_bounds = array<i64: 32, 32>}, {pipeline_mode = #tpu.pipeline_mode<synchronous>, transform_indices = @transform_5, window_bounds = array<i64: 1, 32>}, {transform_indices = @transform_6, window_bounds = array<i64: 8, 16, 32>}]} {
    %c0 = arith.constant 0 : index
    %c0_0 = arith.constant 0 : index
    %c0_1 = arith.constant 0 : index
    %0 = vector.load %arg2[%c0, %c0_0, %c0_1] : memref<8x16x16xf32, #tpu.memory_space<vmem>>, vector<8x16x16xf32>
    %1 = vector.shape_cast %0 : vector<8x16x16xf32> to vector<128x16xf32>
    %c0_2 = arith.constant 0 : index
    %c0_3 = arith.constant 0 : index
    %c0_4 = arith.constant 0 : index
    %2 = vector.load %arg1[%c0_2, %c0_3, %c0_4] : memref<1x128x128xf32, #tpu.memory_space<vmem>>, vector<1x128x128xf32>
    %3 = vector.shape_cast %2 : vector<1x128x128xf32> to vector<128x128xf32>
    %cst = arith.constant dense<0.000000e+00> : vector<128x16xf32>
    %4 = tpu.matmul %3, %1, %cst {dimension_numbers = #tpu.dot_dimension_numbers<[1], [0], [0], [1], [0, 0, 1, 1], [], []>} : vector<128x128xf32>, vector<128x16xf32>, vector<128x16xf32> -> vector<128x16xf32>
    %cst_5 = arith.constant 1.36787939 : f32
    %5 = vector.broadcast %cst_5 : f32 to vector<128x16xf32>
    %6 = arith.mulf %5, %1 : vector<128x16xf32>
    %7 = arith.addf %4, %6 : vector<128x16xf32>
    %c0_6 = arith.constant 0 : index
    %c0_7 = arith.constant 0 : index
    %8 = vector.load %arg3[%c0_6, %c0_7] : memref<16x32xf32, #tpu.memory_space<vmem>>, vector<16x32xf32>
    %cst_8 = arith.constant dense<0.000000e+00> : vector<128x32xf32>
    %9 = tpu.matmul %7, %8, %cst_8 {dimension_numbers = #tpu.dot_dimension_numbers<[1], [0], [0], [1], [0, 0, 1, 1], [], []>} : vector<128x16xf32>, vector<16x32xf32>, vector<128x32xf32> -> vector<128x32xf32>
    %c0_9 = arith.constant 0 : index
    %c0_10 = arith.constant 0 : index
    %10 = vector.load %arg4[%c0_9, %c0_10] : memref<1x32xf32, #tpu.memory_space<vmem>>, vector<1x32xf32>
    %11 = vector.broadcast %10 : vector<1x32xf32> to vector<128x32xf32>
    %12 = arith.addf %9, %11 : vector<128x32xf32>
    %cst_11 = arith.constant 0.000000e+00 : f32
    %13 = vector.broadcast %cst_11 : f32 to vector<128x32xf32>
    %14 = arith.maximumf %12, %13 : vector<128x32xf32>
    %c0_12 = arith.constant 0 : index
    %c0_13 = arith.constant 0 : index
    %15 = vector.load %arg5[%c0_12, %c0_13] : memref<32x32xf32, #tpu.memory_space<vmem>>, vector<32x32xf32>
    %cst_14 = arith.constant dense<0.000000e+00> : vector<128x32xf32>
    %16 = tpu.matmul %14, %15, %cst_14 {dimension_numbers = #tpu.dot_dimension_numbers<[1], [0], [0], [1], [0, 0, 1, 1], [], []>} : vector<128x32xf32>, vector<32x32xf32>, vector<128x32xf32> -> vector<128x32xf32>
    %c0_15 = arith.constant 0 : index
    %c0_16 = arith.constant 0 : index
    %17 = vector.load %arg6[%c0_15, %c0_16] : memref<1x32xf32, #tpu.memory_space<vmem>>, vector<1x32xf32>
    %18 = vector.broadcast %17 : vector<1x32xf32> to vector<128x32xf32>
    %19 = arith.addf %16, %18 : vector<128x32xf32>
    %cst_17 = arith.constant 0.000000e+00 : f32
    %20 = vector.broadcast %cst_17 : f32 to vector<128x32xf32>
    %21 = arith.maximumf %19, %20 : vector<128x32xf32>
    %22 = vector.shape_cast %21 : vector<128x32xf32> to vector<8x16x32xf32>
    %c0_18 = arith.constant 0 : index
    %c0_19 = arith.constant 0 : index
    %c0_20 = arith.constant 0 : index
    %23 = vector.load %arg7[%c0_18, %c0_19, %c0_20] : memref<8x16x32xf32, #tpu.memory_space<vmem>>, vector<8x16x32xf32>
    tpu.vector_store %arg7[%c0_18, %c0_19, %c0_20], %22 {strides = array<i32>} : memref<8x16x32xf32, #tpu.memory_space<vmem>>, vector<8x16x32xf32>,
    return
  }
  func.func @transform_0(%arg0: i32) -> (i32, i32, i32) {
    %c0_i32 = arith.constant 0 : i32
    %c0_i32_0 = arith.constant 0 : i32
    %c0_i32_1 = arith.constant 0 : i32
    return %arg0, %c0_i32, %c0_i32_0 : i32, i32, i32
  }
  func.func @transform_1(%arg0: i32) -> (i32, i32, i32) {
    %c0_i32 = arith.constant 0 : i32
    %c0_i32_0 = arith.constant 0 : i32
    %c0_i32_1 = arith.constant 0 : i32
    return %c0_i32, %arg0, %c0_i32_0 : i32, i32, i32
  }
  func.func @transform_2(%arg0: i32) -> (i32, i32) {
    %c0_i32 = arith.constant 0 : i32
    %c0_i32_0 = arith.constant 0 : i32
    %c0_i32_1 = arith.constant 0 : i32
    return %c0_i32, %c0_i32_0 : i32, i32
  }
  func.func @transform_3(%arg0: i32) -> (i32, i32) {
    %c0_i32 = arith.constant 0 : i32
    %c0_i32_0 = arith.constant 0 : i32
    %c0_i32_1 = arith.constant 0 : i32
    return %c0_i32, %c0_i32_0 : i32, i32
  }
  func.func @transform_4(%arg0: i32) -> (i32, i32) {
    %c0_i32 = arith.constant 0 : i32
    %c0_i32_0 = arith.constant 0 : i32
    %c0_i32_1 = arith.constant 0 : i32
    return %c0_i32, %c0_i32_0 : i32, i32
  }
  func.func @transform_5(%arg0: i32) -> (i32, i32) {
    %c0_i32 = arith.constant 0 : i32
    %c0_i32_0 = arith.constant 0 : i32
    %c0_i32_1 = arith.constant 0 : i32
    return %c0_i32, %c0_i32_0 : i32, i32
  }
  func.func @transform_6(%arg0: i32) -> (i32, i32, i32) {
    %c0_i32 = arith.constant 0 : i32
    %c0_i32_0 = arith.constant 0 : i32
    %c0_i32_1 = arith.constant 0 : i32
    return %c0_i32, %arg0, %c0_i32_0 : i32, i32, i32
  }
}

</mosaic_0001>

<bundles_post_ra>
// kernel: tpu_custom_call.1
= control target key start
LH: loop header
LB: loop body
LE: loop exit
PB: predicated region body
PF: predicated region fallthrough
CT: control target
= control target key end

     0   :  { %11 = vsyncpa [#allocation3], 0  ;;  %s929_s0 = inlined_call_operand.hbm [shape: f32[1,128,128], index: 0, kind: input, shape index: {}]   ;;  %s930_s1 = inlined_call_operand.hbm [shape: f32[8,16,16], index: 1, kind: input, shape index: {}]   ;;  %s931_s2 = inlined_call_operand.hbm [shape: f32[16,32], index: 2, kind: input, shape index: {}]   ;;  %s932_s3 = inlined_call_operand.vmem [shape: f32[1,32], index: 3, kind: input, shape index: {}]   ;;  %s933_s4 = inlined_call_operand.hbm [shape: f32[32,32], index: 4, kind: input, shape index: {}]   ;;  %s934_s5 = inlined_call_operand.vmem [shape: f32[1,32], index: 5, kind: input, shape index: {}]   ;;  %s935_s6 = inlined_call_operand.hbm [shape: f32[8,16,32], index: 6, kind: output, shape index: {}]  }
   0x1   :  { %12 = vsyncpa [#allocation6], 0 }
   0x2   :  { %13 = vsyncpa [#allocation9], 0 }
   0x3   :  { %14 = vsyncpa [#allocation4], 0  ;;  %s32_s23 = sshll.u32 %s930_s1, 4  ;;  %s702_s24 = smov [#allocation5]   ;;  %s33_s23 = int_to_ptr.hbm [resolvable:$true] %s32_s23 }
   0x4   :  { %s34_s25 = sshll.u32 %s702_s24, 4  ;;  %s19_s28 = sshll.u32 %s929_s0, 4  ;;  %s35_s25 = int_to_ptr.vmem [resolvable:$true] %s34_s25  ;;  %s20_s28 = int_to_ptr.hbm [resolvable:$true] %s19_s28 }
   0x5   :  { %s703_s29 = smov 128   ;;  %s704_s30 = smov 8  }
   0x6   :  { %40 = dma.hbm_to_vmem [thread:$0]  %s33_s23, 2048, %s35_s25, [#allocation6], %s703_s29, %s703_s29, %s704_s30  }
   0x7   :  { %s705_s7 = smov [#allocation2]   ;;  %s45_s1 = sshll.u32 %s931_s2, 4  ;;  %s46_s1 = int_to_ptr.hbm [resolvable:$true] %s45_s1 }
   0x8   :  { %s21_s8 = sshll.u32 %s705_s7, 4  ;;  %s60_s12 = sshll.u32 %s933_s4, 4  ;;  %s22_s8 = int_to_ptr.vmem [resolvable:$true] %s21_s8  ;;  %s61_s12 = int_to_ptr.hbm [resolvable:$true] %s60_s12 }
   0x9   :  { %27 = dma.hbm_to_vmem [thread:$0]  %s20_s28, 2048, %s22_s8, [#allocation3], %s703_s29, %s703_s29, %s704_s30  }
   0xa   :  { %s706_s13 = smov [#allocation7]   ;;  %s707_s15 = smov [#allocation8]  }
   0xb   :  { %s47_s14 = sshll.u32 %s706_s13, 4  ;;  %s62_s2 = sshll.u32 %s707_s15, 4  ;;  %s48_s14 = int_to_ptr.vmem [resolvable:$true] %s47_s14  ;;  %s63_s2 = int_to_ptr.vmem [resolvable:$true] %s62_s2 }
   0xc   :  { %53 = dma.hbm_to_vmem [thread:$0]  %s46_s1, 256, %s48_s14, [#allocation6], %s703_s29, %s703_s29, %s704_s30  }
   0xd   :  { %68 = dma.hbm_to_vmem [thread:$0]  %s61_s12, 512, %s63_s2, [#allocation9], %s703_s29, %s703_s29, %s704_s30  }
   0xe   :  { %694 = dma.done.wait [#allocation3], 2048  }
   0xf   :  { %695 = vsyncadd [#allocation3], 4294965248 }
  0x10   :  { %696 = dma.done.wait [#allocation6], 2304  }
  0x11   :  { %697 = vsyncadd [#allocation6], 4294964992 }
  0x12   :  { %698 = dma.done.wait [#allocation9], 512  }
  0x13   :  { %699 = vsyncadd [#allocation9], 4294966784  ;;  %v768_v0 = vld [vmem:[#allocation5 + $0x78] sm:$0xff]  ;;  %v770_v1 = vld [vmem:[#allocation5 + $0x70] sm:$0xff]  ;;  %vm206_vm0 = vcmask 130048   ;;  %vm344_vm1 = vcmask 261120  }
  0x14   :  { %135 = vmatpush.msra.mxu0 %v768_v0  ;;  %543 = vmatpush.msra.mxu3 %v768_v0  ;;  %v774_v2 = vld [vmem:[#allocation5 + $0x68] sm:$0xff]  ;;  %v778_v3 = vld [vmem:[#allocation5 + $0x60] sm:$0xff]  ;;  %v782_v4 = vld [vmem:[#allocation5 + $0x58] sm:$0xff]  ;;  %v133_v59 = vmul.f32 1.3678794, %v770_v1  ;;  %s496_s21 = sshll.u32 %s935_s6, 4  ;;  %s497_s21 = int_to_ptr.hbm [resolvable:$true] %s496_s21 }
  0x15   :  { %v786_v5 = vld [vmem:[#allocation5 + $0x50] sm:$0xff]  ;;  %v790_v6 = vld [vmem:[#allocation5 + $0x48] sm:$0xff]  ;;  %v794_v7 = vld [vmem:[#allocation5 + $0x40] sm:$0xff] }
  0x16   :  { %136 = vmatpush.msra.mxu0 %v770_v1  ;;  %544 = vmatpush.msra.mxu3 %v770_v1  ;;  %v798_v8 = vld [vmem:[#allocation5 + $0x38] sm:$0xff]  ;;  %v802_v9 = vld [vmem:[#allocation5 + $0x30] sm:$0xff]  ;;  %v806_v10 = vld [vmem:[#allocation5 + $0x28] sm:$0xff]  ;;  %v128_v1 = vmul.f32 1.3678794, %v790_v6 }
  0x17   :  { %v810_v11 = vld [vmem:[#allocation5 + $0x20] sm:$0xff]  ;;  %v814_v12 = vld [vmem:[#allocation5 + $0x18] sm:$0xff]  ;;  %v89_v13 = vld [vmem:[#allocation5 + $0x10] sm:$0xff]  ;;  %v124_v50 = vmul.f32 1.3678794, %v806_v10 }
  0x18   :  { %137 = vmatpush.msra.mxu0 %v774_v2  ;;  %545 = vmatpush.msra.mxu3 %v774_v2  ;;  %v88_v14 = vld [vmem:[#allocation5 + $0x8] sm:$0xff]  ;;  %v87_v15 = vld [vmem:[#allocation5] sm:$0xff]  ;;  %v105_v18 = vld [vmem:[#allocation2 + $0x10] sm:$0xff]  ;;  %v121_v40 = vmul.f32 1.3678794, %v89_v13 }
  0x19   :  { %v103_v16 = vld [vmem:[#allocation2] sm:$0xff]  ;;  %v104_v17 = vld [vmem:[#allocation2 + $0x8] sm:$0xff]  ;;  %v106_v19 = vld [vmem:[#allocation2 + $0x18] sm:$0xff]  ;;  %v119_v34 = vmul.f32 1.3678794, %v87_v15 }
  0x1a   :  { %138 = vmatpush.msra.mxu0 %v778_v3  ;;  %546 = vmatpush.msra.mxu3 %v778_v3  ;;  %v114_v20 = vld [vmem:[#allocation2 + $0x58] sm:$0xff]  ;;  %v107_v21 = vld [vmem:[#allocation2 + $0x20] sm:$0xff]  ;;  %v108_v23 = vld [vmem:[#allocation2 + $0x28] sm:$0xff]  ;;  %v120_v37 = vmul.f32 1.3678794, %v88_v14 }
  0x1b   :  { %v115_v22 = vld [vmem:[#allocation2 + $0x60] sm:$0xff]  ;;  %v116_v24 = vld [vmem:[#allocation2 + $0x68] sm:$0xff]  ;;  %v109_v25 = vld [vmem:[#allocation2 + $0x30] sm:$0xff]  ;;  %v122_v43 = vmul.f32 1.3678794, %v814_v12 }
  0x1c   :  { %139 = vmatpush.msra.mxu0 %v782_v4  ;;  %547 = vmatpush.msra.mxu3 %v782_v4  ;;  %v117_v26 = vld [vmem:[#allocation2 + $0x70] sm:$0xff]  ;;  %v110_v27 = vld [vmem:[#allocation2 + $0x38] sm:$0xff]  ;;  %v111_v29 = vld [vmem:[#allocation2 + $0x40] sm:$0xff]  ;;  %v123_v46 = vmul.f32 1.3678794, %v810_v11 }
  0x1d   :  { %v118_v28 = vld [vmem:[#allocation2 + $0x78] sm:$0xff]  ;;  %v112_v30 = vld [vmem:[#allocation2 + $0x48] sm:$0xff]  ;;  %v113_v31 = vld [vmem:[#allocation2 + $0x50] sm:$0xff]  ;;  %v125_v54 = vmul.f32 1.3678794, %v802_v9 }
  0x1e   :  { %140 = vmatpush.msra.mxu0 %v786_v5  ;;  %548 = vmatpush.msra.mxu3 %v786_v5  ;;  %v201_v32 = vld [vmem:[#allocation7 + $0x8] sm:$0xff]  ;;  %v200_v33 = vld [vmem:[#allocation7] sm:$0xff]  ;;  %v126_v58 = vmul.f32 1.3678794, %v798_v8 }
  0x1f   :  { %269 = vmatpush.msra.mxu1 %v201_v32 }
  0x20   :  { %141 = vmatpush.msra.mxu0 %v790_v6  ;;  %549 = vmatpush.msra.mxu3 %v790_v6  ;;  %v131_v6 = vmul.f32 1.3678794, %v778_v3  ;;  %v852_v3 = vld [vmem:[%s932_s3] ss:$0 sm:$0xff] }
  0x21   :  { %270 = vmatpush.msra.mxu1 %v200_v33 }
  0x22   :  { %142 = vmatpush.msra.mxu0 %v794_v7  ;;  %550 = vmatpush.msra.mxu3 %v794_v7 }
  0x24   :  { %143 = vmatpush.msra.mxu0 %v798_v8  ;;  %551 = vmatpush.msra.mxu3 %v798_v8 }
  0x26   :  { %144 = vmatpush.msra.mxu0 %v802_v9  ;;  %552 = vmatpush.msra.mxu3 %v802_v9  ;;  %v134_v9 = vmul.f32 1.3678794, %v768_v0 }
  0x28   :  { %145 = vmatpush.msra.mxu0 %v806_v10  ;;  %553 = vmatpush.msra.mxu3 %v806_v10  ;;  %v127_v10 = vmul.f32 1.3678794, %v794_v7  ;;  %v129_v7 = vmul.f32 1.3678794, %v786_v5  ;;  %v336_v5 = vld [vmem:[#allocation8] sm:$0xff] }
  0x2a   :  { %146 = vmatpush.msra.mxu0 %v810_v11  ;;  %554 = vmatpush.msra.mxu3 %v810_v11 }
  0x2c   :  { %147 = vmatpush.msra.mxu0 %v814_v12  ;;  %555 = vmatpush.msra.mxu3 %v814_v12 }
  0x2e   :  { %148 = vmatpush.msra.mxu0 %v89_v13  ;;  %556 = vmatpush.msra.mxu3 %v89_v13 }
  0x30   :  { %149 = vmatpush.msra.mxu0 %v88_v14  ;;  %557 = vmatpush.msra.mxu3 %v88_v14 }
  0x32   :  { %150 = vmatpush.msra.mxu0 %v87_v15  ;;  %558 = vmatpush.msra.mxu3 %v87_v15 }
  0x33   :  { %151 = vmatmul.f32.vlgmr.msra.gmra.mxu0 %v103_v16  ;;  %184 = vmatmul.f32.vlgmr.msra.gmra.mxu3 %v114_v20  ;;  %v339_v16 = vld [vmem:[#allocation8 + $0x18] sm:$0xff]  ;;  %v338_v20 = vld [vmem:[#allocation8 + $0x10] sm:$0xff] }
  0x34   :  { %559 = vmatpush.msrb.mxu3 %v201_v32  ;;  %405 = vmatpush.msra.mxu2 %v339_v16 }
  0x36   :  { %560 = vmatpush.msrb.mxu3 %v200_v33  ;;  %406 = vmatpush.msra.mxu2 %v338_v20 }
  0x38   :  { %561 = vmatpush.msra.mxu3 %v339_v16 }
  0x3a   :  { %562 = vmatpush.msra.mxu3 %v338_v20 }
  0x3b   :  { %154 = vmatmul.f32.gmra.mxu0 %v104_v17  ;;  %187 = vmatmul.f32.gmra.mxu3 %v115_v22  ;;  %v337_v22 = vld [vmem:[#allocation8 + $0x8] sm:$0xff] }
  0x3c   :  { %407 = vmatpush.msra.mxu2 %v337_v22  ;;  %563 = vmatpush.msra.mxu3 %v337_v22 }
  0x3e   :  { %408 = vmatpush.msra.mxu2 %v336_v5  ;;  %564 = vmatpush.msra.mxu3 %v336_v5 }
  0x43   :  { %157 = vmatmul.f32.gmra.mxu0 %v105_v18  ;;  %190 = vmatmul.f32.gmra.mxu3 %v116_v24  ;;  %v130_v18 = vmul.f32 1.3678794, %v782_v4 }
  0x4b   :  { %160 = vmatmul.f32.gmra.mxu0 %v106_v19  ;;  %193 = vmatmul.f32.gmra.mxu3 %v117_v26 }
  0x53   :  { %163 = vmatmul.f32.gmra.mxu0 %v107_v21  ;;  %196 = vmatmul.f32.gmra.mxu3 %v118_v28 }
  0x5b   :  { %166 = vmatmul.f32.gmra.mxu0 %v108_v23  ;;  %v132_v23 = vmul.f32 1.3678794, %v774_v2 }
  0x63   :  { %169 = vmatmul.f32.gmra.mxu0 %v109_v25 }
  0x6b   :  { %172 = vmatmul.f32.gmra.mxu0 %v110_v27 }
  0x73   :  { %175 = vmatmul.f32.gmra.mxu0 %v111_v29 }
  0x7b   :  { %178 = vmatmul.f32.gmra.mxu0 %v112_v30 }
  0x83   :  { %181 = vmatmul.f32.gmra.mxu0 %v113_v31 }
  0xb0   :  { %v152_v35 = vpop.f32.mrf.mxu0 }
  0xb1   :  { %v153_v36 = vadd.f32 %v152_v35, %v119_v34 }
  0xb3   :  { %511 = vmatmul.msk.f32.vlgmr.msra.gmra.mxu1 %vm206_vm0, %v153_v36 }
  0xb6   :  { %v185_v49 = vpop.f32.mrf.mxu3 }
  0xb7   :  { %v186_v19 = vadd.f32 %v185_v49, %v130_v18 }
  0xb8   :  { %v155_v38 = vpop.f32.mrf.mxu0 }
  0xb9   :  { %v156_v39 = vadd.f32 %v155_v38, %v120_v37 }
  0xbb   :  { %512 = vmatmul.msk.f32.gmra.mxu1 %vm206_vm0, %v156_v39 }
  0xbe   :  { %v188_v53 = vpop.f32.mrf.mxu3 }
  0xbf   :  { %v189_v21 = vadd.f32 %v188_v53, %v131_v6 }
  0xc0   :  { %v158_v41 = vpop.f32.mrf.mxu0 }
  0xc1   :  { %v159_v42 = vadd.f32 %v158_v41, %v121_v40 }
  0xc3   :  { %513 = vmatmul.msk.f32.gmra.mxu1 %vm206_vm0, %v159_v42 }
  0xc6   :  { %v191_v57 = vpop.f32.mrf.mxu3 }
  0xc7   :  { %v192_v4 = vadd.f32 %v191_v57, %v132_v23 }
  0xc8   :  { %v161_v44 = vpop.f32.mrf.mxu0 }
  0xc9   :  { %v162_v45 = vadd.f32 %v161_v44, %v122_v43 }
  0xcb   :  { %514 = vmatmul.msk.f32.gmra.mxu1 %vm206_vm0, %v162_v45 }
  0xce   :  { %v194_v62 = vpop.f32.mrf.mxu3 }
  0xcf   :  { %v195_v63 = vadd.f32 %v194_v62, %v133_v59 }
  0xd0   :  { %v164_v47 = vpop.f32.mrf.mxu0 }
  0xd1   :  { %v165_v48 = vadd.f32 %v164_v47, %v123_v46  ;;  %525 = vmatmul.msk.f32.vlgmr.msrb.gmra.mxu3 %vm206_vm0, %v195_v63 }
  0xd3   :  { %515 = vmatmul.msk.f32.gmra.mxu1 %vm206_vm0, %v165_v48 }
  0xd6   :  { %v197_v13 = vpop.f32.mrf.mxu3 }
  0xd7   :  { %v198_v14 = vadd.f32 %v197_v13, %v134_v9 }
  0xd8   :  { %v167_v51 = vpop.f32.mrf.mxu0 }
  0xd9   :  { %v168_v52 = vadd.f32 %v167_v51, %v124_v50  ;;  %526 = vmatmul.msk.f32.gmra.mxu3 %vm206_vm0, %v198_v14 }
  0xdb   :  { %516 = vmatmul.msk.f32.gmra.mxu1 %vm206_vm0, %v168_v52 }
  0xe0   :  { %v170_v55 = vpop.f32.mrf.mxu0 }
  0xe1   :  { %v171_v56 = vadd.f32 %v170_v55, %v125_v54 }
  0xe3   :  { %517 = vmatmul.msk.f32.gmra.mxu1 %vm206_vm0, %v171_v56 }
  0xe8   :  { %v173_v60 = vpop.f32.mrf.mxu0 }
  0xe9   :  { %v174_v61 = vadd.f32 %v173_v60, %v126_v58 }
  0xeb   :  { %518 = vmatmul.msk.f32.gmra.mxu1 %vm206_vm0, %v174_v61 }
  0xf0   :  { %v176_v11 = vpop.f32.mrf.mxu0 }
  0xf1   :  { %v177_v12 = vadd.f32 %v176_v11, %v127_v10 }
  0xf3   :  { %519 = vmatmul.msk.f32.gmra.mxu1 %vm206_vm0, %v177_v12 }
  0xf8   :  { %v179_v8 = vpop.f32.mrf.mxu0 }
  0xf9   :  { %v180_v15 = vadd.f32 %v179_v8, %v128_v1  ;;  %v889_v8 = vld [vmem:[%s934_s5] ss:$0 sm:$0xff]  ;;  %s708_s5 = smov [#allocation10]  }
  0xfa   :  { %s494_s18 = sshll.u32 %s708_s5, 4  ;;  %s495_s18 = int_to_ptr.vmem [resolvable:$true] %s494_s18 }
  0xfb   :  { %520 = vmatmul.msk.f32.gmra.mxu1 %vm206_vm0, %v180_v15 }
 0x100   :  { %v182_v0 = vpop.f32.mrf.mxu0 }
 0x101   :  { %v183_v17 = vadd.f32 %v182_v0, %v129_v7 }
 0x103   :  { %521 = vmatmul.msk.f32.gmra.mxu1 %vm206_vm0, %v183_v17 }
 0x10b   :  { %522 = vmatmul.msk.f32.gmra.mxu1 %vm206_vm0, %v186_v19 }
 0x113   :  { %523 = vmatmul.msk.f32.gmra.mxu1 %vm206_vm0, %v189_v21 }
 0x11b   :  { %524 = vmatmul.msk.f32.gmra.mxu1 %vm206_vm0, %v192_v4 }
 0x130   :  { %v272_v24 = vpop.f32.mrf.mxu1 }
 0x131   :  { %v273_v25 = vadd.f32 %v852_v3, %v272_v24 }
 0x133   :  { %v320_v26 = vmax.f32 %v273_v25, 0.0 }
 0x135   :  { %527 = vmatmul.msk.f32.vlgmr.msra.gmra.mxu2 %vm344_vm1, %v320_v26 }
 0x138   :  { %v275_v27 = vpop.f32.mrf.mxu1 }
 0x139   :  { %v276_v28 = vadd.f32 %v852_v3, %v275_v27 }
 0x13b   :  { %v321_v29 = vmax.f32 %v276_v28, 0.0 }
 0x13d   :  { %528 = vmatmul.msk.f32.gmra.mxu2 %vm344_vm1, %v321_v29 }
 0x140   :  { %v278_v2 = vpop.f32.mrf.mxu1 }
 0x141   :  { %v279_v30 = vadd.f32 %v852_v3, %v278_v2 }
 0x143   :  { %v322_v31 = vmax.f32 %v279_v30, 0.0 }
 0x145   :  { %529 = vmatmul.msk.f32.gmra.mxu2 %vm344_vm1, %v322_v31 }
 0x148   :  { %v281_v32 = vpop.f32.mrf.mxu1 }
 0x149   :  { %v282_v33 = vadd.f32 %v852_v3, %v281_v32 }
 0x14b   :  { %v323_v34 = vmax.f32 %v282_v33, 0.0 }
 0x14d   :  { %530 = vmatmul.msk.f32.gmra.mxu2 %vm344_vm1, %v323_v34 }
 0x150   :  { %v284_v35 = vpop.f32.mrf.mxu1 }
 0x151   :  { %v285_v36 = vadd.f32 %v852_v3, %v284_v35 }
 0x153   :  { %v324_v37 = vmax.f32 %v285_v36, 0.0 }
 0x154   :  { %v314_v48 = vpop.f32.mrf.mxu3 }
 0x155   :  { %531 = vmatmul.msk.f32.gmra.mxu2 %vm344_vm1, %v324_v37  ;;  %v315_v50 = vadd.f32 %v852_v3, %v314_v48 }
 0x157   :  { %v334_v52 = vmax.f32 %v315_v50, 0.0 }
 0x158   :  { %v287_v38 = vpop.f32.mrf.mxu1 }
 0x159   :  { %v288_v39 = vadd.f32 %v852_v3, %v287_v38  ;;  %541 = vmatmul.msk.f32.vlgmr.msra.gmra.mxu3 %vm344_vm1, %v334_v52 }
 0x15b   :  { %v325_v40 = vmax.f32 %v288_v39, 0.0 }
 0x15c   :  { %v317_v54 = vpop.f32.mrf.mxu3 }
 0x15d   :  { %532 = vmatmul.msk.f32.gmra.mxu2 %vm344_vm1, %v325_v40  ;;  %v318_v56 = vadd.f32 %v852_v3, %v317_v54 }
 0x15f   :  { %v335_v58 = vmax.f32 %v318_v56, 0.0 }
 0x160   :  { %v290_v41 = vpop.f32.mrf.mxu1 }
 0x161   :  { %v291_v42 = vadd.f32 %v852_v3, %v290_v41  ;;  %542 = vmatmul.msk.f32.gmra.mxu3 %vm344_vm1, %v335_v58 }
 0x163   :  { %v326_v43 = vmax.f32 %v291_v42, 0.0 }
 0x165   :  { %533 = vmatmul.msk.f32.gmra.mxu2 %vm344_vm1, %v326_v43 }
 0x168   :  { %v293_v44 = vpop.f32.mrf.mxu1 }
 0x169   :  { %v294_v45 = vadd.f32 %v852_v3, %v293_v44 }
 0x16b   :  { %v327_v46 = vmax.f32 %v294_v45, 0.0 }
 0x16d   :  { %534 = vmatmul.msk.f32.gmra.mxu2 %vm344_vm1, %v327_v46 }
 0x170   :  { %v296_v47 = vpop.f32.mrf.mxu1 }
 0x171   :  { %v297_v49 = vadd.f32 %v852_v3, %v296_v47 }
 0x173   :  { %v328_v51 = vmax.f32 %v297_v49, 0.0 }
 0x175   :  { %535 = vmatmul.msk.f32.gmra.mxu2 %vm344_vm1, %v328_v51 }
 0x178   :  { %v299_v53 = vpop.f32.mrf.mxu1 }
 0x179   :  { %v300_v55 = vadd.f32 %v852_v3, %v299_v53 }
 0x17b   :  { %v329_v57 = vmax.f32 %v300_v55, 0.0 }
 0x17d   :  { %536 = vmatmul.msk.f32.gmra.mxu2 %vm344_vm1, %v329_v57 }
 0x180   :  { %v302_v59 = vpop.f32.mrf.mxu1 }
 0x181   :  { %v303_v60 = vadd.f32 %v852_v3, %v302_v59 }
 0x183   :  { %v330_v61 = vmax.f32 %v303_v60, 0.0 }
 0x185   :  { %537 = vmatmul.msk.f32.gmra.mxu2 %vm344_vm1, %v330_v61 }
 0x188   :  { %v305_v62 = vpop.f32.mrf.mxu1 }
 0x189   :  { %v306_v63 = vadd.f32 %v852_v3, %v305_v62 }
 0x18b   :  { %v331_v10 = vmax.f32 %v306_v63, 0.0 }
 0x18d   :  { %538 = vmatmul.msk.f32.gmra.mxu2 %vm344_vm1, %v331_v10 }
 0x190   :  { %v308_v9 = vpop.f32.mrf.mxu1 }
 0x191   :  { %v309_v11 = vadd.f32 %v852_v3, %v308_v9 }
 0x193   :  { %v332_v12 = vmax.f32 %v309_v11, 0.0 }
 0x195   :  { %539 = vmatmul.msk.f32.gmra.mxu2 %vm344_vm1, %v332_v12 }
 0x198   :  { %v311_v13 = vpop.f32.mrf.mxu1 }
 0x199   :  { %v312_v14 = vadd.f32 %v852_v3, %v311_v13 }
 0x19b   :  { %v333_v1 = vmax.f32 %v312_v14, 0.0 }
 0x19d   :  { %540 = vmatmul.msk.f32.gmra.mxu2 %vm344_vm1, %v333_v1 }
 0x1b8   :  { %v410_v15 = vpop.f32.mrf.mxu2 }
 0x1b9   :  { %v411_v16 = vadd.f32 %v889_v8, %v410_v15 }
 0x1bb   :  { %v458_v7 = vmax.f32 %v411_v16, 0.0 }
 0x1bd   :  { %474 = vst.msk [vmem:[#allocation10] sm:$0xff] %vm344_vm1, %v458_v7 }
 0x1c0   :  { %v413_v0 = vpop.f32.mrf.mxu2 }
 0x1c1   :  { %v414_v17 = vadd.f32 %v889_v8, %v413_v0 }
 0x1c3   :  { %v459_v18 = vmax.f32 %v414_v17, 0.0 }
 0x1c5   :  { %475 = vst.msk [vmem:[#allocation10 + $0x8] sm:$0xff] %vm344_vm1, %v459_v18 }
 0x1c8   :  { %v416_v19 = vpop.f32.mrf.mxu2 }
 0x1c9   :  { %v417_v6 = vadd.f32 %v889_v8, %v416_v19 }
 0x1cb   :  { %v460_v20 = vmax.f32 %v417_v6, 0.0 }
 0x1cd   :  { %476 = vst.msk [vmem:[#allocation10 + $0x10] sm:$0xff] %vm344_vm1, %v460_v20 }
 0x1d0   :  { %v419_v21 = vpop.f32.mrf.mxu2 }
 0x1d1   :  { %v420_v22 = vadd.f32 %v889_v8, %v419_v21 }
 0x1d3   :  { %v461_v5 = vmax.f32 %v420_v22, 0.0 }
 0x1d5   :  { %477 = vst.msk [vmem:[#allocation10 + $0x18] sm:$0xff] %vm344_vm1, %v461_v5 }
 0x1d8   :  { %v422_v23 = vpop.f32.mrf.mxu2 }
 0x1d9   :  { %v423_v4 = vadd.f32 %v889_v8, %v422_v23 }
 0x1db   :  { %v462_v3 = vmax.f32 %v423_v4, 0.0 }
 0x1dc   :  { %v452_v33 = vpop.f32.mrf.mxu3 }
 0x1dd   :  { %478 = vst.msk [vmem:[#allocation10 + $0x20] sm:$0xff] %vm344_vm1, %v462_v3  ;;  %v453_v35 = vadd.f32 %v889_v8, %v452_v33 }
 0x1df   :  { %v472_v37 = vmax.f32 %v453_v35, 0.0 }
 0x1e0   :  { %v425_v24 = vpop.f32.mrf.mxu2 }
 0x1e1   :  { %v426_v25 = vadd.f32 %v889_v8, %v425_v24  ;;  %488 = vst.msk [vmem:[#allocation10 + $0x70] sm:$0xff] %vm344_vm1, %v472_v37 }
 0x1e3   :  { %v463_v26 = vmax.f32 %v426_v25, 0.0 }
 0x1e4   :  { %v455_v39 = vpop.f32.mrf.mxu3 }
 0x1e5   :  { %479 = vst.msk [vmem:[#allocation10 + $0x28] sm:$0xff] %vm344_vm1, %v463_v26  ;;  %v456_v41 = vadd.f32 %v889_v8, %v455_v39 }
 0x1e7   :  { %v473_v43 = vmax.f32 %v456_v41, 0.0 }
 0x1e8   :  { %v428_v27 = vpop.f32.mrf.mxu2 }
 0x1e9   :  { %v429_v28 = vadd.f32 %v889_v8, %v428_v27  ;;  %489 = vst.msk [vmem:[#allocation10 + $0x78] sm:$0xff] %vm344_vm1, %v473_v43 }
 0x1eb   :  { %v464_v29 = vmax.f32 %v429_v28, 0.0 }
 0x1ed   :  { %480 = vst.msk [vmem:[#allocation10 + $0x30] sm:$0xff] %vm344_vm1, %v464_v29 }
 0x1f0   :  { %v431_v2 = vpop.f32.mrf.mxu2 }
 0x1f1   :  { %v432_v30 = vadd.f32 %v889_v8, %v431_v2 }
 0x1f3   :  { %v465_v31 = vmax.f32 %v432_v30, 0.0 }
 0x1f5   :  { %481 = vst.msk [vmem:[#allocation10 + $0x38] sm:$0xff] %vm344_vm1, %v465_v31 }
 0x1f8   :  { %v434_v32 = vpop.f32.mrf.mxu2 }
 0x1f9   :  { %v435_v34 = vadd.f32 %v889_v8, %v434_v32 }
 0x1fb   :  { %v466_v36 = vmax.f32 %v435_v34, 0.0 }
 0x1fd   :  { %482 = vst.msk [vmem:[#allocation10 + $0x40] sm:$0xff] %vm344_vm1, %v466_v36 }
 0x200   :  { %v437_v38 = vpop.f32.mrf.mxu2 }
 0x201   :  { %v438_v40 = vadd.f32 %v889_v8, %v437_v38 }
 0x203   :  { %v467_v42 = vmax.f32 %v438_v40, 0.0 }
 0x205   :  { %483 = vst.msk [vmem:[#allocation10 + $0x48] sm:$0xff] %vm344_vm1, %v467_v42 }
 0x208   :  { %v440_v44 = vpop.f32.mrf.mxu2 }
 0x209   :  { %v441_v45 = vadd.f32 %v889_v8, %v440_v44 }
 0x20b   :  { %v468_v46 = vmax.f32 %v441_v45, 0.0 }
 0x20d   :  { %484 = vst.msk [vmem:[#allocation10 + $0x50] sm:$0xff] %vm344_vm1, %v468_v46 }
 0x210   :  { %v443_v47 = vpop.f32.mrf.mxu2 }
 0x211   :  { %v444_v48 = vadd.f32 %v889_v8, %v443_v47 }
 0x213   :  { %v469_v49 = vmax.f32 %v444_v48, 0.0 }
 0x215   :  { %485 = vst.msk [vmem:[#allocation10 + $0x58] sm:$0xff] %vm344_vm1, %v469_v49 }
 0x218   :  { %v446_v50 = vpop.f32.mrf.mxu2 }
 0x219   :  { %v447_v51 = vadd.f32 %v889_v8, %v446_v50 }
 0x21b   :  { %v470_v52 = vmax.f32 %v447_v51, 0.0 }
 0x21d   :  { %486 = vst.msk [vmem:[#allocation10 + $0x60] sm:$0xff] %vm344_vm1, %v470_v52 }
 0x220   :  { %v449_v53 = vpop.f32.mrf.mxu2 }
 0x221   :  { %v450_v54 = vadd.f32 %v889_v8, %v449_v53 }
 0x223   :  { %v471_v55 = vmax.f32 %v450_v54, 0.0 }
 0x225   :  { %487 = vst.msk [vmem:[#allocation10 + $0x68] sm:$0xff] %vm344_vm1, %v471_v55 }
 0x226   :  { %502 = dma.vmem_to_hbm [thread:$0]  %s495_s18, 2048, %s497_s21, [#allocation4], %s703_s29, %s703_s29, %s704_s30  }
 0x227   :  { %700 = dma.done.wait [#allocation4], 2048  }
 0x228   :  { %701 = vsyncadd [#allocation4], 4294965248 }
 0x229   :  { %507 = vsyncpa [#allocation3], 1 }
 0x22a   :  { %508 = vsyncpa [#allocation6], 1 }
 0x22b   :  { %509 = vsyncpa [#allocation9], 1 }
 0x22c   :  { %510 = vsyncpa [#allocation4], 1 }

</bundles_post_ra>
